<compile_context>
chip_gen: v6e
topology: v6e:2x2x1
jax: 0.10.0
libtpu: 0.0.40
codegen_flags: <defaults>
</compile_context>

<pallas_src>
import functools

import jax
import jax.numpy as jnp
from jax.experimental import pallas as pl
from jax.experimental.pallas import tpu as pltpu


def _round_up(x, m):
    return (x + m - 1) // m * m


def _ddi_energy_pooling_kernel(h_ref, w1_ref, b1_ref, w2_ref, b2_ref, o_ref,
                               acc_ref, *, n_rows, inv_n, tile_n):
    # h_ref : (tile_n, F) native dtype     w1_ref: (F, dim)   b1_ref: (1, dim)
    # w2_ref: (dim, 1)                     b2_ref: (1,) SMEM  o_ref : (1, 1)
    # acc_ref: (1, F) f32 scratch (column-sum accumulator)
    i = pl.program_id(0)
    last = pl.num_programs(0) - 1

    @pl.when(i == 0)
    def _init():
        acc_ref[...] = jnp.zeros_like(acc_ref)

    h_f32 = h_ref[...].astype(jnp.float32)
    if n_rows % tile_n != 0:
        # Ragged last tile: rows past N in the block hold undefined data, so
        # zero them with a select before the reduction (0*NaN-safe).
        row_ids = jax.lax.broadcasted_iota(jnp.int32, (tile_n, 1), 0)
        valid = (row_ids + i * tile_n) < n_rows
        h_f32 = jnp.where(valid, h_f32, 0.0)

    # Exact f32 column sum of this tile (VPU/XLU, hidden under the h DMA).
    acc_ref[...] += jnp.sum(h_f32, axis=0, keepdims=True)

    @pl.when(i == last)
    def _finalize():
        mean = acc_ref[...] * inv_n                                   # (1, F)
        # lin1 + ReLU -> (1, dim)
        z1 = jnp.dot(mean, w1_ref[...],
                     preferred_element_type=jnp.float32,
                     precision=jax.lax.Precision.HIGHEST) + b1_ref[...]
        a1 = jnp.maximum(z1, 0.0)
        # lin2 -> (1, 1); .sum() over a length-1 output is the identity.
        z2 = jnp.dot(a1, w2_ref[...],
                     preferred_element_type=jnp.float32,
                     precision=jax.lax.Precision.HIGHEST) + b2_ref[0]
        o_ref[...] = jnp.maximum(z2, 0.0)


def ddi_energy_pooling(h, w1, b1, w2, b2, *, tile_n=2048):
    """h: (N, 200) any float dtype. w1: (200, dim), b1: (dim,), w2: (dim, 1), b2: (1,).

    Returns a scalar f32 with the same semantics as the torch module.
    Weights are passed pre-transposed as (in_features, out_features).
    """
    N, F = h.shape
    dim = w1.shape[1]

    # Row tile: multiple of 8 (sublane constraint), no larger than N rounded
    # up to 8.  Default 2048 amortizes per-step overhead; on v7x, 4096-8192 is
    # better still (fits the 32 MiB scoped VMEM limit set below).
    tile_n = max(8, (int(tile_n) // 8) * 8)
    tile_n = min(tile_n, _round_up(N, 8))
    num_tiles = pl.cdiv(N, tile_n)

    w1_2d = w1.astype(jnp.float32)                    # (F, dim)
    b1_2d = b1.reshape(1, dim).astype(jnp.float32)    # (1, dim)
    w2_2d = w2.reshape(dim, 1).astype(jnp.float32)    # (dim, 1)
    b2_1d = b2.reshape(1).astype(jnp.float32)         # (1,) -> SMEM

    kernel = functools.partial(_ddi_energy_pooling_kernel,
                               n_rows=N, inv_n=1.0 / N, tile_n=tile_n)

    itemsize = jnp.dtype(h.dtype).itemsize
    cost = pl.CostEstimate(
        flops=N * F + 2 * F * dim + 2 * dim,
        transcendentals=0,
        bytes_accessed=N * F * itemsize + 4 * (F * dim + dim + dim + 1 + 1),
    )

    out = pl.pallas_call(
        kernel,
        out_shape=jax.ShapeDtypeStruct((1, 1), jnp.float32),
        grid_spec=pltpu.PrefetchScalarGridSpec(
            num_scalar_prefetch=0,
            grid=(num_tiles,),
            in_specs=[
                pl.BlockSpec((tile_n, F), lambda i: (i, 0)),        # h tile (native dtype)
                pl.BlockSpec((F, dim), lambda i: (0, 0)),           # W1 (VMEM-resident)
                pl.BlockSpec((1, dim), lambda i: (0, 0)),           # b1 (VMEM-resident)
                pl.BlockSpec((dim, 1), lambda i: (0, 0)),           # W2 (VMEM-resident)
                pl.BlockSpec(memory_space=pltpu.MemorySpace.SMEM),  # b2 scalar
            ],
            out_specs=pl.BlockSpec((1, 1), lambda i: (0, 0)),
            scratch_shapes=[pltpu.VMEM((1, F), jnp.float32)],
        ),
        compiler_params=pltpu.CompilerParams(
            dimension_semantics=("arbitrary",),        # N axis is a reduction
            vmem_limit_bytes=32 * 1024 * 1024,         # safe on v5e/v6e/v7x
        ),
        cost_estimate=cost,
    )(h, w1_2d, b1_2d, w2_2d, b2_1d)
    return out[0, 0]


def reference(h, w1, b1, w2, b2):
    out = jnp.mean(h.astype(jnp.float32), axis=0)
    out = jax.nn.relu(jnp.dot(out, w1, precision=jax.lax.Precision.HIGHEST) + b1)
    out = jax.nn.relu(
        jnp.sum(jnp.dot(out, w2, precision=jax.lax.Precision.HIGHEST) + b2))
    return out


if __name__ == "__main__":
    key = jax.random.PRNGKey(0)
    k_h, k_w1, k_b1, k_w2, k_b2, k_h2, k_h3 = jax.random.split(key, 7)

    IN_F = 200     # fixed by the module: Linear(200, dim)
    DIM = 32       # hidden dim

    # torch Linear keeps weight as (out, in); we pass (in, out) so the kernel
    # computes x @ W.
    w1 = jax.random.normal(k_w1, (IN_F, DIM), dtype=jnp.float32) * 0.05
    b1 = jax.random.normal(k_b1, (DIM,), dtype=jnp.float32) * 0.05
    w2 = jax.random.normal(k_w2, (DIM, 1), dtype=jnp.float32) * 0.05
    b2 = jax.random.normal(k_b2, (1,), dtype=jnp.float32) * 0.05

    # Small case: single grid step, no ragged-tile mask path.
    N = 8
    h = jax.random.normal(k_h, (N, IN_F), dtype=jnp.float32)
    out = jax.block_until_ready(ddi_energy_pooling(h, w1, b1, w2, b2))
    ref = reference(h, w1, b1, w2, b2)
    assert jnp.allclose(out, ref, atol=1e-5, rtol=1e-5), (out, ref)

    # Multi-step accumulation with a ragged last tile (N % tile_n != 0).
    N2 = 1000
    h2 = jax.random.normal(k_h2, (N2, IN_F), dtype=jnp.float32)
    out2 = jax.block_until_ready(
        ddi_energy_pooling(h2, w1, b1, w2, b2, tile_n=256))
    ref2 = reference(h2, w1, b1, w2, b2)
    assert jnp.allclose(out2, ref2, atol=1e-4, rtol=1e-4), (out2, ref2)

    # Native bf16 input (half the HBM bytes), N not a multiple of 8.
    N3 = 777
    h3 = jax.random.normal(k_h3, (N3, IN_F),
                           dtype=jnp.float32).astype(jnp.bfloat16)
    out3 = jax.block_until_ready(
        ddi_energy_pooling(h3, w1, b1, w2, b2, tile_n=256))
    ref3 = reference(h3, w1, b1, w2, b2)
    assert jnp.allclose(out3, ref3, atol=2e-2, rtol=2e-2), (out3, ref3)

    print("KERNEL_OK")
</pallas_src>

<mosaic_0001>
module attributes {stable_mosaic.version = 11 : i64} {
  func.func @_ddi_energy_pooling_kernel(%arg0: i32, %arg1: memref<8x200xf32, #tpu.memory_space<vmem>>, %arg2: memref<200x32xf32, #tpu.memory_space<vmem>>, %arg3: memref<1x32xf32, #tpu.memory_space<vmem>>, %arg4: memref<32x1xf32, #tpu.memory_space<vmem>>, %arg5: memref<1xf32, #tpu.memory_space<smem>>, %arg6: memref<1x1xf32, #tpu.memory_space<vmem>>, %arg7: memref<1x200xf32, #tpu.memory_space<vmem>>) attributes {dimension_semantics = [#tpu.dimension_semantics<arbitrary>], iteration_bounds = array<i64: 1>, scalar_prefetch = 0 : i64, scratch_operands = 1 : i64, tpu.core_type = #tpu.core_type<tc>, window_params = [{transform_indices = @transform_0, window_bounds = array<i64: 8, 200>}, {pipeline_mode = #tpu.pipeline_mode<synchronous>, transform_indices = @transform_1, window_bounds = array<i64: 200, 32>}, {pipeline_mode = #tpu.pipeline_mode<synchronous>, transform_indices = @transform_2, window_bounds = array<i64: 1, 32>}, {pipeline_mode = #tpu.pipeline_mode<synchronous>, transform_indices = @transform_3, window_bounds = array<i64: 32, 1>}, {transform_indices = @transform_4, window_bounds = array<i64: 1>}, {pipeline_mode = #tpu.pipeline_mode<synchronous>, transform_indices = @transform_5, window_bounds = array<i64: 1, 1>}]} {
    %c0_i32 = arith.constant 0 : i32
    %0 = arith.cmpi eq, %arg0, %c0_i32 : i32
    %1 = arith.extui %0 : i1 to i32
    %c0_i32_0 = arith.constant 0 : i32
    %2 = arith.cmpi ne, %1, %c0_i32_0 : i32
    scf.if %2 {
      %cst_8 = arith.constant 0.000000e+00 : f32
      %12 = vector.broadcast %cst_8 : f32 to vector<1x200xf32>
      %c0_9 = arith.constant 0 : index
      %c0_10 = arith.constant 0 : index
      %13 = vector.load %arg7[%c0_9, %c0_10] : memref<1x200xf32, #tpu.memory_space<vmem>>, vector<1x200xf32>
      tpu.vector_store %arg7[%c0_9, %c0_10], %12 {strides = array<i32>} : memref<1x200xf32, #tpu.memory_space<vmem>>, vector<1x200xf32>,
    } else {
    }
    %c0 = arith.constant 0 : index
    %c0_1 = arith.constant 0 : index
    %3 = vector.load %arg1[%c0, %c0_1] : memref<8x200xf32, #tpu.memory_space<vmem>>, vector<8x200xf32>
    %c0_2 = arith.constant 0 : index
    %c0_3 = arith.constant 0 : index
    %4 = vector.load %arg7[%c0_2, %c0_3] : memref<1x200xf32, #tpu.memory_space<vmem>>, vector<1x200xf32>
    %cst = arith.constant dense<0.000000e+00> : vector<200xf32>
    %5 = vector.multi_reduction <add>, %3, %cst [0] : vector<8x200xf32> to vector<200xf32>
    %6 = vector.shape_cast %5 : vector<200xf32> to vector<1x200xf32>
    %7 = arith.addf %4, %6 : vector<1x200xf32>
    %c0_4 = arith.constant 0 : index
    %c0_5 = arith.constant 0 : index
    %8 = vector.load %arg7[%c0_4, %c0_5] : memref<1x200xf32, #tpu.memory_space<vmem>>, vector<1x200xf32>
    tpu.vector_store %arg7[%c0_4, %c0_5], %7 {strides = array<i32>} : memref<1x200xf32, #tpu.memory_space<vmem>>, vector<1x200xf32>,
    %c0_i32_6 = arith.constant 0 : i32
    %9 = arith.cmpi eq, %arg0, %c0_i32_6 : i32
    %10 = arith.extui %9 : i1 to i32
    %c0_i32_7 = arith.constant 0 : i32
    %11 = arith.cmpi ne, %10, %c0_i32_7 : i32
    scf.if %11 {
      %c0_8 = arith.constant 0 : index
      %c0_9 = arith.constant 0 : index
      %12 = vector.load %arg7[%c0_8, %c0_9] : memref<1x200xf32, #tpu.memory_space<vmem>>, vector<1x200xf32>
      %cst_10 = arith.constant 1.250000e-01 : f32
      %13 = vector.broadcast %cst_10 : f32 to vector<1x200xf32>
      %14 = arith.mulf %12, %13 : vector<1x200xf32>
      %c0_11 = arith.constant 0 : index
      %c0_12 = arith.constant 0 : index
      %15 = vector.load %arg2[%c0_11, %c0_12] : memref<200x32xf32, #tpu.memory_space<vmem>>, vector<200x32xf32>
      %cst_13 = arith.constant dense<0.000000e+00> : vector<1x32xf32>
      %16 = tpu.matmul %14, %15, %cst_13 {dimension_numbers = #tpu.dot_dimension_numbers<[1], [0], [0], [1], [0, 0, 1, 1], [], []>, precision = #tpu.contract_precision<fp32>} : vector<1x200xf32>, vector<200x32xf32>, vector<1x32xf32> -> vector<1x32xf32>
      %c0_14 = arith.constant 0 : index
      %c0_15 = arith.constant 0 : index
      %17 = vector.load %arg3[%c0_14, %c0_15] : memref<1x32xf32, #tpu.memory_space<vmem>>, vector<1x32xf32>
      %18 = arith.addf %16, %17 : vector<1x32xf32>
      %cst_16 = arith.constant 0.000000e+00 : f32
      %19 = vector.broadcast %cst_16 : f32 to vector<1x32xf32>
      %20 = arith.maximumf %18, %19 : vector<1x32xf32>
      %c0_17 = arith.constant 0 : index
      %c0_18 = arith.constant 0 : index
      %21 = vector.load %arg4[%c0_17, %c0_18] : memref<32x1xf32, #tpu.memory_space<vmem>>, vector<32x1xf32>
      %cst_19 = arith.constant dense<0.000000e+00> : vector<1x1xf32>
      %22 = tpu.matmul %20, %21, %cst_19 {dimension_numbers = #tpu.dot_dimension_numbers<[1], [0], [0], [1], [0, 0, 1, 1], [], []>, precision = #tpu.contract_precision<fp32>} : vector<1x32xf32>, vector<32x1xf32>, vector<1x1xf32> -> vector<1x1xf32>
      %c0_20 = arith.constant 0 : index
      %23 = memref.load %arg5[%c0_20] : memref<1xf32, #tpu.memory_space<smem>>
      %24 = vector.broadcast %23 : f32 to vector<1x1xf32>
      %25 = arith.addf %22, %24 : vector<1x1xf32>
      %cst_21 = arith.constant 0.000000e+00 : f32
      %26 = vector.broadcast %cst_21 : f32 to vector<1x1xf32>
      %27 = arith.maximumf %25, %26 : vector<1x1xf32>
      %c0_22 = arith.constant 0 : index
      %c0_23 = arith.constant 0 : index
      %28 = vector.load %arg6[%c0_22, %c0_23] : memref<1x1xf32, #tpu.memory_space<vmem>>, vector<1x1xf32>
      tpu.vector_store %arg6[%c0_22, %c0_23], %27 {strides = array<i32>} : memref<1x1xf32, #tpu.memory_space<vmem>>, vector<1x1xf32>,
    } else {
    }
    return
  }
  func.func @transform_0(%arg0: i32) -> (i32, i32) {
    %c0_i32 = arith.constant 0 : i32
    %c0_i32_0 = arith.constant 0 : i32
    return %arg0, %c0_i32 : i32, i32
  }
  func.func @transform_1(%arg0: i32) -> (i32, i32) {
    %c0_i32 = arith.constant 0 : i32
    %c0_i32_0 = arith.constant 0 : i32
    %c0_i32_1 = arith.constant 0 : i32
    return %c0_i32, %c0_i32_0 : i32, i32
  }
  func.func @transform_2(%arg0: i32) -> (i32, i32) {
    %c0_i32 = arith.constant 0 : i32
    %c0_i32_0 = arith.constant 0 : i32
    %c0_i32_1 = arith.constant 0 : i32
    return %c0_i32, %c0_i32_0 : i32, i32
  }
  func.func @transform_3(%arg0: i32) -> (i32, i32) {
    %c0_i32 = arith.constant 0 : i32
    %c0_i32_0 = arith.constant 0 : i32
    %c0_i32_1 = arith.constant 0 : i32
    return %c0_i32, %c0_i32_0 : i32, i32
  }
  func.func @transform_4(%arg0: i32) -> i32 {
    %c0_i32 = arith.constant 0 : i32
    %c0_i32_0 = arith.constant 0 : i32
    return %c0_i32 : i32
  }
  func.func @transform_5(%arg0: i32) -> (i32, i32) {
    %c0_i32 = arith.constant 0 : i32
    %c0_i32_0 = arith.constant 0 : i32
    %c0_i32_1 = arith.constant 0 : i32
    return %c0_i32, %c0_i32_0 : i32, i32
  }
}

</mosaic_0001>

<bundles_post_ra>
// kernel: tpu_custom_call.1
= control target key start
LH: loop header
LB: loop body
LE: loop exit
PB: predicated region body
PF: predicated region fallthrough
CT: control target
= control target key end

     0   :  { %v2349_v3 = vmov 0.0   ;;  %s2322_s0 = inlined_call_operand.vmem [shape: f32[8,200], index: 0, kind: input, shape index: {}]   ;;  %s2323_s1 = inlined_call_operand.vmem [shape: f32[200,32], index: 1, kind: input, shape index: {}]   ;;  %s2324_s2 = inlined_call_operand.vmem [shape: f32[1,32], index: 2, kind: input, shape index: {}]   ;;  %s2325_s3 = inlined_call_operand.vmem [shape: f32[32,1], index: 3, kind: input, shape index: {}]   ;;  %s2326_s4 = inlined_call_operand.<no memory space> [shape: f32[1], index: 4, kind: input, shape index: {}]   ;;  %s2327_s5 = inlined_call_operand.hbm [shape: f32[1,1], index: 5, kind: output, shape index: {}]  }
   0x1   :  { %v92_v0 = vld [vmem:[%s2323_s1 + $0x78] sm:$0xff]  ;;  %v91_v1 = vld [vmem:[%s2323_s1 + $0x70] sm:$0xff]  ;;  %v90_v2 = vld [vmem:[%s2323_s1 + $0x68] sm:$0xff]  ;;  %115 = vmatprep.subr.mxu0 %v2349_v3  ;;  %220 = vmatprep.subr.mxu1 %v2349_v3 }
   0x2   :  { %v1565_v4 = vand.u32 4294901760, %v92_v0  ;;  %v1567_v5 = vand.u32 4294901760, %v91_v1  ;;  %v1569_v6 = vand.u32 4294901760, %v90_v2  ;;  %v89_v7 = vld [vmem:[%s2323_s1 + $0x60] sm:$0xff]  ;;  %v88_v8 = vld [vmem:[%s2323_s1 + $0x58] sm:$0xff]  ;;  %v87_v9 = vld [vmem:[%s2323_s1 + $0x50] sm:$0xff] }
   0x3   :  { %v1581_v10 = vand.u32 4294901760, %v89_v7  ;;  %v1583_v11 = vand.u32 4294901760, %v88_v8  ;;  %v1585_v12 = vand.u32 4294901760, %v87_v9  ;;  %v86_v13 = vld [vmem:[%s2323_s1 + $0x48] sm:$0xff]  ;;  %v85_v14 = vld [vmem:[%s2323_s1 + $0x40] sm:$0xff]  ;;  %v84_v19 = vld [vmem:[%s2323_s1 + $0x38] sm:$0xff] }
   0x4   :  { %117 = vmatpush1.msra.mxu0 %v1565_v4  ;;  %v1595_v15 = vsub.f32 %v92_v0, %v1565_v4  ;;  %v1598_v16 = vsub.f32 %v91_v1, %v1567_v5  ;;  %v1600_v17 = vand.u32 4294901760, %v86_v13  ;;  %v1603_v18 = vsub.f32 %v90_v2, %v1569_v6  ;;  %v83_v26 = vld [vmem:[%s2323_s1 + $0x30] sm:$0xff]  ;;  %v82_v34 = vld [vmem:[%s2323_s1 + $0x28] sm:$0xff]  ;;  %v81_v41 = vld [vmem:[%s2323_s1 + $0x20] sm:$0xff] }
   0x5   :  { %118 = vmatprep.subr.mxu0 %v2349_v3  ;;  %v1610_v20 = vsub.f32 %v89_v7, %v1581_v10  ;;  %v1613_v21 = vsub.f32 %v88_v8, %v1583_v11  ;;  %v1619_v25 = vand.u32 4294901760, %v85_v14  ;;  %v1626_v28 = vand.u32 4294901760, %v84_v19 }
   0x6   :  { %120 = vmatpush1.msra.mxu0 %v1567_v5  ;;  %v2341_v22 = vand.u32 4294901760, %v1595_v15  ;;  %v2340_v23 = vand.u32 4294901760, %v1598_v16  ;;  %v2339_v24 = vand.u32 4294901760, %v1603_v18  ;;  %v1630_v30 = vsub.f32 %v87_v9, %v1585_v12 }
   0x7   :  { %121 = vmatprep.subr.mxu0 %v2349_v3  ;;  %v2338_v27 = vand.u32 4294901760, %v1610_v20  ;;  %v2336_v29 = vand.u32 4294901760, %v1613_v21  ;;  %v1646_v35 = vsub.f32 %v86_v13, %v1600_v17  ;;  %v1649_v36 = vand.u32 4294901760, %v83_v26 }
   0x8   :  { %123 = vmatpush1.msra.mxu0 %v1569_v6  ;;  %v224_v31 = vsub.f32 %v1595_v15, %v2341_v22  ;;  %v231_v32 = vsub.f32 %v1598_v16, %v2340_v23  ;;  %v238_v33 = vsub.f32 %v1603_v18, %v2339_v24  ;;  %v2335_v40 = vand.u32 4294901760, %v1630_v30 }
   0x9   :  { %124 = vmatprep.subr.mxu0 %v2349_v3  ;;  %v245_v39 = vsub.f32 %v1610_v20, %v2338_v27  ;;  %v1660_v42 = vand.u32 4294901760, %v82_v34  ;;  %v1663_v43 = vsub.f32 %v85_v14, %v1619_v25 }
   0xa   :  { %126 = vmatpush1.msra.mxu0 %v1581_v10  ;;  %v225_v37 = vand.u32 4294901760, %v224_v31  ;;  %v232_v38 = vand.u32 4294901760, %v231_v32 }
   0xb   :  { %127 = vmatprep.subr.mxu0 %v2349_v3 }
   0xc   :  { %11 = vsyncpa [#allocation5], 0  ;;  %129 = vmatpush1.msra.mxu0 %v1583_v11  ;;  %226 = vmatpush1.msra.mxu1 %v225_v37  ;;  %v239_v44 = vand.u32 4294901760, %v238_v33  ;;  %v252_v45 = vsub.f32 %v1613_v21, %v2336_v29  ;;  %v2334_v46 = vand.u32 4294901760, %v1646_v35  ;;  %v1671_v47 = vsub.f32 %v84_v19, %v1626_v28  ;;  %v80_v49 = vld [vmem:[%s2323_s1 + $0x18] sm:$0xff]  ;;  %v79_v53 = vld [vmem:[%s2323_s1 + $0x10] sm:$0xff] }
   0xd   :  { %130 = vmatprep.subr.mxu0 %v2349_v3  ;;  %227 = vmatprep.subr.mxu1 %v2349_v3  ;;  %v1675_v48 = vand.u32 4294901760, %v81_v41  ;;  %v246_v50 = vand.u32 4294901760, %v245_v39  ;;  %v259_v51 = vsub.f32 %v1630_v30, %v2335_v40  ;;  %v2333_v52 = vand.u32 4294901760, %v1663_v43  ;;  %v78_v61 = vld [vmem:[%s2323_s1 + $0x8] sm:$0xff]  ;;  %v77_v7 = vld [vmem:[%s2323_s1] sm:$0xff]  ;;  %s1524_s30 = smov [#allocation4]  }
   0xe   :  { %132 = vmatpush1.msra.mxu0 %v1585_v12  ;;  %233 = vmatpush1.msra.mxu1 %v232_v38  ;;  %v1689_v54 = vsub.f32 %v83_v26, %v1649_v36  ;;  %v1694_v55 = vsub.f32 %v82_v34, %v1660_v42  ;;  %v253_v56 = vand.u32 4294901760, %v252_v45  ;;  %v266_v57 = vsub.f32 %v1646_v35, %v2334_v46  ;;  %v101_v19 = vld [vmem:[%s2323_s1 + $0xc0] sm:$0xff]  ;;  %v100_v38 = vld [vmem:[%s2323_s1 + $0xb8] sm:$0xff]  ;;  %s1391_s6 = sshll.u32 %s1524_s30, 4  ;;  %s1392_s6 = int_to_ptr.vmem [resolvable:$true] %s1391_s6 }
   0xf   :  { %133 = vmatprep.subr.mxu0 %v2349_v3  ;;  %234 = vmatprep.subr.mxu1 %v2349_v3  ;;  %v1700_v58 = vand.u32 4294901760, %v80_v49  ;;  %v2331_v59 = vand.u32 4294901760, %v1671_v47  ;;  %v1705_v60 = vand.u32 4294901760, %v79_v53  ;;  %v260_v62 = vand.u32 4294901760, %v259_v51  ;;  %v31_v51 = vld [vmem:[%s2322_s0] sm:$0xff]  ;;  %s1499_s7 = scalar_lea.vmem %s1392_s6, 16  ;;  %p1504_p1 = scmp.lt.s32.totalorder %s1392_s6, %s1392_s6 }
  0x10   :  { %135 = vmatpush1.msra.mxu0 %v1600_v17  ;;  %240 = vmatpush1.msra.mxu1 %v239_v44  ;;  %v273_v63 = vsub.f32 %v1663_v43, %v2333_v52  ;;  %v2330_v0 = vand.u32 4294901760, %v1689_v54  ;;  %v1716_v1 = vsub.f32 %v81_v41, %v1675_v48  ;;  %v2329_v2 = vand.u32 4294901760, %v1694_v55  ;;  %p1500_p0 = scmp.ne.s32.totalorder %s1392_s6, %s1499_s7 }
  0x11   :  { %136 = vmatprep.subr.mxu0 %v2349_v3  ;;  %241 = vmatprep.subr.mxu1 %v2349_v3  ;;  %v267_v8 = vand.u32 4294901760, %v266_v57  ;;  %v280_v9 = vsub.f32 %v1671_v47, %v2331_v59  ;;  %v1728_v13 = vand.u32 4294901760, %v78_v61  ;;  %v1731_v14 = vsub.f32 %v80_v49, %v1700_v58  ;;  %v99_v49 = vld [vmem:[%s2323_s1 + $0xb0] sm:$0xff] }
  0x12   :  { %138 = vmatpush1.msra.mxu0 %v1619_v25  ;;  %247 = vmatpush1.msra.mxu1 %v246_v50  ;;  %v1739_v26 = vsub.f32 %v79_v53, %v1705_v60  ;;  %v274_v31 = vand.u32 4294901760, %v273_v63  ;;  %v287_v32 = vsub.f32 %v1689_v54, %v2330_v0  ;;  %v1745_v33 = vand.u32 4294901760, %v77_v7  ;;  %v98_v63 = vld [vmem:[%s2323_s1 + $0xa8] sm:$0xff] }
  0x13   :  { %139 = vmatprep.subr.mxu0 %v2349_v3  ;;  %248 = vmatprep.subr.mxu1 %v2349_v3  ;;  %v2328_v34 = vand.u32 4294901760, %v1716_v1  ;;  %v294_v37 = vsub.f32 %v1694_v55, %v2329_v2  ;;  %v2342_v39 = vlaneseq  ;;  %v281_v41 = vand.u32 4294901760, %v280_v9 }
  0x14   :  { %141 = vmatpush1.msra.mxu0 %v1626_v28  ;;  %254 = vmatpush1.msra.mxu1 %v253_v56  ;;  %2356 = vst [vmem:[#allocation7_spill] sm:$0xff] %v1739_v26  ;;  %v1757_v44 = vand.u32 4294901760, %v101_v19  ;;  %v2332_v45 = vand.u32 4294901760, %v1731_v14  ;;  %v1764_v50 = vsub.f32 %v78_v61, %v1728_v13  ;;  %v2337_v53 = vand.u32 4294901760, %v1739_v26  ;;  %v32_v56 = vld [vmem:[%s2322_s0 + $0x8] sm:$0xff] }
  0x15   :  { %142 = vmatprep.subr.mxu0 %v2349_v3  ;;  %255 = vmatprep.subr.mxu1 %v2349_v3  ;;  %vm40_vm0 = vcmask 588800   ;;  %v288_v57 = vand.u32 4294901760, %v287_v32  ;;  %v301_v61 = vsub.f32 %v1716_v1, %v2328_v34  ;;  %v295_v9 = vand.u32 4294901760, %v294_v37  ;;  %v97_v37 = vld [vmem:[%s2323_s1 + $0xa0] sm:$0xff] }
  0x16   :  { %144 = vmatpush1.msra.mxu0 %v1649_v36  ;;  %261 = vmatpush1.msra.mxu1 %v260_v62  ;;  %2357 = vst [vmem:[#allocation8_spill] sm:$0xff] %v1764_v50  ;;  %v1779_v62 = vand.u32 4294901760, %v100_v38  ;;  %vm1792_vm1 = vcmp.lt.s32.totalorder %v2342_v39, 200  ;;  %v34_v34 = vrot.slane %v31_v51, 4  ;;  %v2343_v2 = vand.u32 4294901760, %v1764_v50 }
  0x17   :  { %145 = vmatprep.subr.mxu0 %v2349_v3  ;;  %262 = vmatprep.subr.mxu1 %v2349_v3  ;;  %v1805_v0 = vsub.f32 %v101_v19, %v1757_v44  ;;  %30 = vst.msk [vmem:[#allocation2] sm:$0x3] %vm1792_vm1, %v2349_v3  ;;  %v41_v59 = vsel %vm40_vm0, %v32_v56, 0.0  ;;  %v302_v19 = vand.u32 4294901760, %v301_v61  ;;  %v96_v56 = vld [vmem:[%s2323_s1 + $0x98] sm:$0xff]  ;;  %v2362_v23 = vlaneseq }
  0x18   :  { %147 = vmatpush1.msra.mxu0 %v1660_v42  ;;  %268 = vmatpush1.msra.mxu1 %v267_v8  ;;  %v1785_v8 = vsub.f32 %v77_v7, %v1745_v33  ;;  %v308_v7 = vsub.f32 %v1731_v14, %v2332_v45  ;;  %v1816_v45 = vand.u32 4294901760, %v98_v63  ;;  %v35_v52 = vadd.f32 %v34_v34, %v31_v51  ;;  %v95_v34 = vld [vmem:[%s2323_s1 + $0x90] sm:$0xff] }
  0x19   :  { %148 = vmatprep.subr.mxu0 %v2349_v3  ;;  %269 = vmatprep.subr.mxu1 %v2349_v3  ;;  %2361 = vst [vmem:[#allocation10_spill] sm:$0xff] %v1805_v0  ;;  %v42_v46 = vrot.slane %v41_v59, 4  ;;  %v1824_v29 = vsub.f32 %v100_v38, %v1779_v62  ;;  %v1522_v61 = vmov 1966171168   ;;  %v322_v38 = vsub.f32 %v1764_v50, %v2343_v2  ;;  %v94_v2 = vld [vmem:[%s2323_s1 + $0x88] sm:$0xff] }
  0x1a   :  { %150 = vmatpush1.msra.mxu0 %v1675_v48  ;;  %275 = vmatpush1.msra.mxu1 %v274_v31  ;;  %2358 = vst [vmem:[#allocation9_spill] sm:$0xff] %v1785_v8  ;;  %v1789_v31 = vand.u32 4294901760, %v99_v49  ;;  %v2344_v40 = vand.u32 4294901760, %v1785_v8  ;;  %v36_v51 = vrot.slane %v35_v52, 2  ;;  %v52_v27 = vunpack.c.l.s4 %v1522_v61 }
  0x1b   :  { %151 = vmatprep.subr.mxu0 %v2349_v3  ;;  %276 = vmatprep.subr.mxu1 %v2349_v3  ;;  %v309_v24 = vand.u32 4294901760, %v308_v7  ;;  %v323_v7 = vand.u32 4294901760, %v322_v38  ;;  %v2365_v38 = vand.u32 4294901760, %v1824_v29  ;;  %vm1523_vm2 = vmmov 0  }
  0x1c   :  { %153 = vmatpush1.msra.mxu0 %v1700_v58  ;;  %282 = vmatpush1.msra.mxu1 %v281_v41  ;;  %v315_v41 = vsub.f32 %v1739_v26, %v2337_v53  ;;  %v1828_v53 = vand.u32 4294901760, %v97_v37  ;;  %v1839_v22 = vsub.f32 %v99_v49, %v1789_v31  ;;  %v37_v61 = vadd.f32 %v36_v51, %v35_v52 }
  0x1d   :  { %154 = vmatprep.subr.mxu0 %v2349_v3  ;;  %283 = vmatprep.subr.mxu1 %v2349_v3  ;;  %v1850_v49 = vand.u32 4294901760, %v95_v34  ;;  %v53_v51 = vunpack.c.0.s8 %v52_v27  ;;  %v2364_v27 = vmov 0.0   ;;  %vm893_vm3 = vcmask 261120  }
  0x1e   :  { %156 = vmatpush1.msra.mxu0 %v1705_v60  ;;  %289 = vmatpush1.msra.mxu1 %v288_v57  ;;  %v43_v57 = vadd.f32 %v42_v46, %v41_v59  ;;  %v316_v46 = vand.u32 4294901760, %v315_v41  ;;  %v1843_v59 = vand.u32 4294901760, %v96_v56  ;;  %v1856_v41 = vsub.f32 %v98_v63, %v1816_v45 }
  0x1f   :  { %157 = vmatprep.subr.mxu0 %v2349_v3  ;;  %290 = vmatprep.subr.mxu1 %v2349_v3  ;;  %v38_v52 = vrot.slane %v37_v61, 1  ;;  %v357_v63 = vsub.f32 %v1824_v29, %v2365_v38  ;;  %vm1383_vm4 = vcmask 0  }
  0x20   :  { %159 = vmatpush1.msra.mxu0 %v1728_v13  ;;  %296 = vmatpush1.msra.mxu1 %v295_v9  ;;  %v44_v39 = vrot.slane %v43_v57, 2  ;;  %v329_v9 = vsub.f32 %v1785_v8, %v2344_v40  ;;  %v1861_v40 = vshrl.u32 %v2362_v23, 7  ;;  %v2363_v8 = vand.u32 4294901760, %v1805_v0 }
  0x21   :  { %160 = vmatprep.subr.mxu0 %v2349_v3  ;;  %297 = vmatprep.subr.mxu1 %v2349_v3  ;;  %v1876_v23 = vand.u32 4294901760, %v94_v2 }
  0x22   :  { %162 = vmatpush1.msra.mxu0 %v1745_v33  ;;  %303 = vmatpush1.msra.mxu1 %v302_v19  ;;  %v45_v19 = vadd.f32 %v44_v39, %v43_v57  ;;  %v350_v50 = vsub.f32 %v1805_v0, %v2363_v8  ;;  %v1872_v39 = vsub.f32 %v97_v37, %v1828_v53  ;;  %v330_v8 = vand.u32 4294901760, %v329_v9 }
  0x23   :  { %177 = vmatprep.subr.mxu0 %v2349_v3  ;;  %304 = vmatprep.subr.mxu1 %v2349_v3  ;;  %v93_v3 = vld [vmem:[%s2323_s1 + $0x80] sm:$0xff]  ;;  %v1884_v37 = vsub.f32 %v96_v56, %v1843_v59  ;;  %v2366_v9 = vand.u32 4294901760, %v1839_v22  ;;  %v1897_v0 = vsub.f32 %v95_v34, %v1850_v49 }
  0x24   :  { %179 = vmatpush2.msra.mxu0 %v1757_v44  ;;  %310 = vmatpush1.msra.mxu1 %v309_v24  ;;  %v39_v24 = vadd.f32 %v38_v52, %v37_v61  ;;  %v46_v57 = vrot.slane %v45_v19, 1  ;;  %v1888_v26 = vand.u32 4294901760, %v93_v3  ;;  %v56_v52 = vsub.s32 %v53_v51, %v1861_v40 }
  0x25   :  { %180 = vmatprep.subr.mxu0 %v2364_v27  ;;  %311 = vmatprep.subr.mxu1 %v2364_v27  ;;  %v364_v38 = vsub.f32 %v1839_v22, %v2366_v9  ;;  %v2355_v56 = vand.u32 4294901760, %v1872_v39  ;;  %v358_v51 = vand.u32 4294901760, %v357_v63  ;;  %v1907_v9 = vsub.f32 %v94_v2, %v1876_v23 }
  0x26   :  { %182 = vmatpush2.msra.mxu0 %v1779_v62  ;;  %317 = vmatpush1.msra.mxu1 %v316_v46  ;;  %v47_v61 = vadd.f32 %v46_v57, %v45_v19  ;;  %v351_v46 = vand.u32 4294901760, %v350_v50  ;;  %v2367_v50 = vand.u32 4294901760, %v1856_v41  ;;  %v384_v57 = vand.u32 4294901760, %v1884_v37 }
  0x27   :  { %183 = vmatprep.subr.mxu0 %v2364_v27  ;;  %318 = vmatprep.subr.mxu1 %v2364_v27  ;;  %v378_v63 = vsub.f32 %v1872_v39, %v2355_v56 }
  0x28   :  { %185 = vmatpush2.msra.mxu0 %v1789_v31  ;;  %324 = vmatpush1.msra.mxu1 %v323_v7  ;;  %v50_v19 = vcombine.low %v39_v24, %v47_v61  ;;  %v371_v7 = vsub.f32 %v1856_v41, %v2367_v50  ;;  %v365_v24 = vand.u32 4294901760, %v364_v38  ;;  %v391_v61 = vand.u32 4294901760, %v1897_v0 }
  0x29   :  { %186 = vmatprep.subr.mxu0 %v2364_v27  ;;  %325 = vmatprep.subr.mxu1 %v2364_v27  ;;  %v1917_v50 = vsub.f32 %v93_v3, %v1888_v26  ;;  %v385_v38 = vsub.f32 %v1884_v37, %v384_v57  ;;  %v379_v56 = vand.u32 4294901760, %v378_v63 }
  0x2a   :  { %188 = vmatpush2.msra.mxu0 %v1816_v45  ;;  %331 = vmatpush1.msra.mxu1 %v330_v8  ;;  %v57_v34 = vrot.slane %v50_v19, %v56_v52  ;;  %v33_v8 = vld [vmem:[#allocation2] sm:$0x3]  ;;  %v398_v19 = vand.u32 4294901760, %v1907_v9 }
  0x2b   :  { %189 = vmatprep.subr.mxu0 %v2364_v27  ;;  %346 = vmatprep.subr.mxu1 %v2364_v27 }
  0x2c   :  { %191 = vmatpush2.msra.mxu0 %v1828_v53  ;;  %352 = vmatpush2.msra.mxu1 %v351_v46  ;;  %v64_v2 = vrot.slane %v57_v34, %v56_v52  ;;  %v372_v46 = vand.u32 4294901760, %v371_v7  ;;  %v392_v52 = vsub.f32 %v1897_v0, %v391_v61  ;;  %v386_v7 = vand.u32 4294901760, %v385_v38 }
  0x2d   :  { %192 = vmatprep.subr.mxu0 %v2364_v27  ;;  %353 = vmatprep.subr.mxu1 %v2364_v27  ;;  %v399_v34 = vsub.f32 %v1907_v9, %v398_v19 }
  0x2e   :  { %194 = vmatpush2.msra.mxu0 %v1843_v59  ;;  %359 = vmatpush2.msra.mxu1 %v358_v51  ;;  %v66_v3 = vadd.f32 %v64_v2, %v33_v8  ;;  %v405_v51 = vand.u32 4294901760, %v1917_v50  ;;  %v110_v8 = vsub.s32 1, %v1861_v40  ;;  %v106_v2 = vsub.s32 0, %v1861_v40 }
  0x2f   :  { %195 = vmatprep.subr.mxu0 %v2364_v27  ;;  %360 = vmatprep.subr.mxu1 %v2364_v27  ;;  %v400_v63 = vand.u32 4294901760, %v399_v34 }
  0x30   :  { %197 = vmatpush2.msra.mxu0 %v1850_v49  ;;  %366 = vmatpush2.msra.mxu1 %v365_v24  ;;  %71 = vst.msk [vmem:[#allocation2] sm:$0x3] %vm1792_vm1, %v66_v3  ;;  %v393_v24 = vand.u32 4294901760, %v392_v52  ;;  %v406_v32 = vsub.f32 %v1917_v50, %v405_v51 }
  0x31   :  { %198 = vmatprep.subr.mxu0 %v2364_v27  ;;  %367 = vmatprep.subr.mxu1 %v2364_v27 }
  0x32   :  { %200 = vmatpush2.msra.mxu0 %v1876_v23  ;;  %373 = vmatpush2.msra.mxu1 %v372_v46 }
  0x33   :  { %201 = vmatprep.subr.mxu0 %v2364_v27  ;;  %374 = vmatprep.subr.mxu1 %v2364_v27 }
  0x34   :  { %203 = vmatpush2.msra.mxu0 %v1888_v26  ;;  %380 = vmatpush2.msra.mxu1 %v379_v56  ;;  %v407_v56 = vand.u32 4294901760, %v406_v32 }
  0x35   :  { %381 = vmatprep.subr.mxu1 %v2364_v27  ;;  %417 = vmatprep.subr.mxu0 %v2364_v27 }
  0x36   :  { %387 = vmatpush2.msra.mxu1 %v386_v7 }
  0x37   :  { %388 = vmatprep.subr.mxu1 %v2364_v27  ;;  %v75_v46 = vld [vmem:[#allocation2] sm:$0x3] }
  0x38   :  { %394 = vmatpush2.msra.mxu1 %v393_v24  ;;  %v76_v38 = vmul.f32 0.125, %v75_v46 }
  0x39   :  { %395 = vmatprep.subr.mxu1 %v2364_v27 }
  0x3a   :  { %401 = vmatpush2.msra.mxu1 %v400_v63  ;;  %v111_v3 = vrot.slane %v76_v38, %v110_v8  ;;  %v107_v52 = vrot.slane %v76_v38, %v106_v2 }
  0x3b   :  { %402 = vmatprep.subr.mxu1 %v2364_v27 }
  0x3c   :  { %408 = vmatpush2.msra.mxu1 %v407_v56  ;;  %v113_v7 = vsel %vm40_vm0, %v111_v3, 0  ;;  %v1955_v34 = vand.u32 4294901760, %v107_v52  ;;  %v2368_v3 = vld [vmem:[#allocation7_spill] sm:$0xff] }
  0x3d   :  { %541 = vmatprep.subr.mxu1 %v2364_v27  ;;  %v1958_v40 = vand.u32 4294901760, %v113_v7 }
  0x3e   :  { %v1961_v24 = vsub.f32 %v107_v52, %v1955_v34  ;;  %v2369_v52 = vld [vmem:[#allocation8_spill] sm:$0xff] }
  0x3f   :  { %v1964_v32 = vsub.f32 %v113_v7, %v1958_v40  ;;  %410 = vmatprep.mubr.f32.mxu1 %v1958_v40  ;;  %v2370_v7 = vld [vmem:[#allocation9_spill] sm:$0xff] }
  0x40   :  { %v212_v63 = vand.u32 4294901760, %v1961_v24  ;;  %412 = vmatmul.mubr.f32.vlgmr.msra.gmra.mxu1 %v1955_v34 }
  0x41   :  { %v206_v8 = vand.u32 4294901760, %v1964_v32  ;;  %543 = vmatpush1.msra.mxu1 %v1565_v4 }
  0x42   :  { %v213_v2 = vsub.f32 %v1961_v24, %v212_v63  ;;  %544 = vmatprep.subr.mxu1 %v2364_v27 }
  0x43   :  { %v207_v46 = vsub.f32 %v1964_v32, %v206_v8  ;;  %546 = vmatpush1.msra.mxu1 %v1567_v5  ;;  %633 = vmatprep.mubr.f32.mxu1 %v206_v8  ;;  %v2371_v8 = vld [vmem:[#allocation10_spill] sm:$0xff] }
  0x44   :  { %v214_v56 = vand.u32 4294901760, %v213_v2  ;;  %547 = vmatprep.subr.mxu1 %v2364_v27 }
  0x45   :  { %v208_v38 = vand.u32 4294901760, %v207_v46  ;;  %549 = vmatpush1.msra.mxu1 %v1569_v6 }
  0x46   :  { %550 = vmatprep.subr.mxu1 %v2364_v27 }
  0x47   :  { %209 = vmatprep.mubr.f32.mxu0 %v208_v38  ;;  %552 = vmatpush1.msra.mxu1 %v1581_v10 }
  0x48   :  { %215 = vmatmul.mubr.f32.vlgmr.msra.gmra.mxu0 %v214_v56  ;;  %553 = vmatprep.subr.mxu1 %v2364_v27 }
  0x49   :  { %420 = vmatpush1.msra.mxu0 %v1595_v15  ;;  %555 = vmatpush1.msra.mxu1 %v1583_v11 }
  0x4a   :  { %421 = vmatprep.subr.mxu0 %v2364_v27  ;;  %556 = vmatprep.subr.mxu1 %v2364_v27 }
  0x4b   :  { %424 = vmatpush1.msra.mxu0 %v1598_v16  ;;  %558 = vmatpush1.msra.mxu1 %v1585_v12 }
  0x4c   :  { %425 = vmatprep.subr.mxu0 %v2364_v27  ;;  %559 = vmatprep.subr.mxu1 %v2364_v27 }
  0x4d   :  { %428 = vmatpush1.msra.mxu0 %v1603_v18  ;;  %561 = vmatpush1.msra.mxu1 %v1600_v17 }
  0x4e   :  { %429 = vmatprep.subr.mxu0 %v2364_v27  ;;  %562 = vmatprep.subr.mxu1 %v2364_v27 }
  0x4f   :  { %432 = vmatpush1.msra.mxu0 %v1610_v20  ;;  %564 = vmatpush1.msra.mxu1 %v1619_v25 }
  0x50   :  { %433 = vmatprep.subr.mxu0 %v2364_v27  ;;  %565 = vmatprep.subr.mxu1 %v2364_v27 }
  0x51   :  { %436 = vmatpush1.msra.mxu0 %v1613_v21  ;;  %567 = vmatpush1.msra.mxu1 %v1626_v28 }
  0x52   :  { %437 = vmatprep.subr.mxu0 %v2364_v27  ;;  %568 = vmatprep.subr.mxu1 %v2364_v27 }
  0x53   :  { %440 = vmatpush1.msra.mxu0 %v1630_v30  ;;  %570 = vmatpush1.msra.mxu1 %v1649_v36 }
  0x54   :  { %441 = vmatprep.subr.mxu0 %v2364_v27  ;;  %571 = vmatprep.subr.mxu1 %v2364_v27 }
  0x55   :  { %444 = vmatpush1.msra.mxu0 %v1646_v35  ;;  %573 = vmatpush1.msra.mxu1 %v1660_v42 }
  0x56   :  { %445 = vmatprep.subr.mxu0 %v2364_v27  ;;  %574 = vmatprep.subr.mxu1 %v2364_v27 }
  0x57   :  { %448 = vmatpush1.msra.mxu0 %v1663_v43  ;;  %576 = vmatpush1.msra.mxu1 %v1675_v48 }
  0x58   :  { %449 = vmatprep.subr.mxu0 %v2364_v27  ;;  %577 = vmatprep.subr.mxu1 %v2364_v27 }
  0x59   :  { %452 = vmatpush1.msra.mxu0 %v1671_v47  ;;  %579 = vmatpush1.msra.mxu1 %v1700_v58 }
  0x5a   :  { %453 = vmatprep.subr.mxu0 %v2364_v27  ;;  %580 = vmatprep.subr.mxu1 %v2364_v27 }
  0x5b   :  { %456 = vmatpush1.msra.mxu0 %v1689_v54  ;;  %582 = vmatpush1.msra.mxu1 %v1705_v60 }
  0x5c   :  { %457 = vmatprep.subr.mxu0 %v2364_v27  ;;  %583 = vmatprep.subr.mxu1 %v2364_v27 }
  0x5d   :  { %460 = vmatpush1.msra.mxu0 %v1694_v55  ;;  %585 = vmatpush1.msra.mxu1 %v1728_v13 }
  0x5e   :  { %461 = vmatprep.subr.mxu0 %v2364_v27  ;;  %586 = vmatprep.subr.mxu1 %v2364_v27 }
  0x5f   :  { %464 = vmatpush1.msra.mxu0 %v1716_v1  ;;  %588 = vmatpush1.msra.mxu1 %v1745_v33 }
  0x60   :  { %465 = vmatprep.subr.mxu0 %v2364_v27  ;;  %603 = vmatprep.subr.mxu1 %v2364_v27 }
  0x61   :  { %468 = vmatpush1.msra.mxu0 %v1731_v14  ;;  %605 = vmatpush2.msra.mxu1 %v1757_v44 }
  0x62   :  { %469 = vmatprep.subr.mxu0 %v2364_v27  ;;  %606 = vmatprep.subr.mxu1 %v2364_v27 }
  0x63   :  { %472 = vmatpush1.msra.mxu0 %v2368_v3  ;;  %608 = vmatpush2.msra.mxu1 %v1779_v62 }
  0x64   :  { %473 = vmatprep.subr.mxu0 %v2364_v27  ;;  %609 = vmatprep.subr.mxu1 %v2364_v27 }
  0x65   :  { %476 = vmatpush1.msra.mxu0 %v2369_v52  ;;  %611 = vmatpush2.msra.mxu1 %v1789_v31 }
  0x66   :  { %477 = vmatprep.subr.mxu0 %v2364_v27  ;;  %612 = vmatprep.subr.mxu1 %v2364_v27 }
  0x67   :  { %480 = vmatpush1.msra.mxu0 %v2370_v7  ;;  %614 = vmatpush2.msra.mxu1 %v1816_v45 }
  0x68   :  { %495 = vmatprep.subr.mxu0 %v2364_v27  ;;  %615 = vmatprep.subr.mxu1 %v2364_v27 }
  0x69   :  { %498 = vmatpush2.msra.mxu0 %v2371_v8  ;;  %533 = vmatprep.mubr.f32.mxu0 %v1964_v32 }
  0x6a   :  { %499 = vmatprep.subr.mxu0 %v2364_v27  ;;  %617 = vmatpush2.msra.mxu1 %v1828_v53 }
  0x6b   :  { %502 = vmatpush2.msra.mxu0 %v1824_v29  ;;  %618 = vmatprep.subr.mxu1 %v2364_v27 }
  0x6c   :  { %503 = vmatprep.subr.mxu0 %v2364_v27  ;;  %620 = vmatpush2.msra.mxu1 %v1843_v59 }
  0x6d   :  { %506 = vmatpush2.msra.mxu0 %v1839_v22  ;;  %621 = vmatprep.subr.mxu1 %v2364_v27 }
  0x6e   :  { %507 = vmatprep.subr.mxu0 %v2364_v27  ;;  %623 = vmatpush2.msra.mxu1 %v1850_v49 }
  0x6f   :  { %510 = vmatpush2.msra.mxu0 %v1856_v41  ;;  %624 = vmatprep.subr.mxu1 %v2364_v27 }
  0x70   :  { %511 = vmatprep.subr.mxu0 %v2364_v27  ;;  %626 = vmatpush2.msra.mxu1 %v1876_v23 }
  0x71   :  { %514 = vmatpush2.msra.mxu0 %v1872_v39  ;;  %627 = vmatprep.subr.mxu1 %v2364_v27 }
  0x72   :  { %515 = vmatprep.subr.mxu0 %v2364_v27  ;;  %629 = vmatpush2.msra.mxu1 %v1888_v26 }
  0x73   :  { %518 = vmatpush2.msra.mxu0 %v1884_v37  ;;  %637 = vmatmul.mubr.f32.vlgmr.msra.gmra.mxu1 %v212_v63 }
  0x74   :  { %519 = vmatprep.subr.mxu0 %v2364_v27  ;;  %789 = vmatprep.subr.mxu1 %v2364_v27 }
  0x75   :  { %522 = vmatpush2.msra.mxu0 %v1897_v0  ;;  %791 = vmatpush1.msra.mxu1 %v1565_v4  ;;  %v2372_v4 = vand.u32 4294901760, %v1595_v15  ;;  %v2378_v15 = vand.u32 4294901760, %v1646_v35  ;;  %v2387_v35 = vand.u32 4294901760, %v2370_v7 }
  0x76   :  { %523 = vmatprep.subr.mxu0 %v2364_v27  ;;  %792 = vmatprep.subr.mxu1 %v2364_v27 }
  0x77   :  { %526 = vmatpush2.msra.mxu0 %v1907_v9  ;;  %794 = vmatpush1.msra.mxu1 %v1567_v5  ;;  %v2373_v5 = vand.u32 4294901760, %v1598_v16  ;;  %v2379_v16 = vand.u32 4294901760, %v1663_v43  ;;  %v2390_v43 = vand.u32 4294901760, %v1839_v22  ;;  %v890_v22 = vld [vmem:[%s2325_s3 + $0x18] sm:$0xff] }
  0x78   :  { %527 = vmatprep.subr.mxu0 %v2364_v27  ;;  %795 = vmatprep.subr.mxu1 %v2364_v27 }
  0x79   :  { %530 = vmatpush2.msra.mxu0 %v1917_v50  ;;  %797 = vmatpush1.msra.mxu1 %v1569_v6  ;;  %v2374_v6 = vand.u32 4294901760, %v1603_v18  ;;  %v2381_v18 = vand.u32 4294901760, %v1689_v54  ;;  %v889_v54 = vld [vmem:[%s2325_s3 + $0x10] sm:$0xff]  ;;  %v102_v50 = vld [vmem:[%s2324_s2] sm:$0x1] }
  0x7a   :  { %536 = vmatmul.mubr.f32.vlgmr.msra.gmra.mxu0 %v1961_v24  ;;  %642 = vmatprep.subr.mxu0 %v2364_v27 }
  0x7b   :  { %646 = vmatpush1.msra.mxu0 %v2372_v4  ;;  %798 = vmatprep.subr.mxu1 %v2364_v27 }
  0x7c   :  { %647 = vmatprep.subr.mxu0 %v2364_v27  ;;  %800 = vmatpush1.msra.mxu1 %v1581_v10  ;;  %v2375_v10 = vand.u32 4294901760, %v1610_v20  ;;  %v2382_v20 = vand.u32 4294901760, %v1694_v55 }
  0x7d   :  { %651 = vmatpush1.msra.mxu0 %v2373_v5  ;;  %801 = vmatprep.subr.mxu1 %v2364_v27 }
  0x7e   :  { %652 = vmatprep.subr.mxu0 %v2364_v27  ;;  %803 = vmatpush1.msra.mxu1 %v1583_v11  ;;  %v2376_v11 = vand.u32 4294901760, %v1613_v21  ;;  %v2383_v21 = vand.u32 4294901760, %v1716_v1 }
  0x7f   :  { %656 = vmatpush1.msra.mxu0 %v2374_v6  ;;  %804 = vmatprep.subr.mxu1 %v2364_v27 }
  0x80   :  { %657 = vmatprep.subr.mxu0 %v2364_v27  ;;  %806 = vmatpush1.msra.mxu1 %v1585_v12  ;;  %v2377_v12 = vand.u32 4294901760, %v1630_v30  ;;  %v2386_v30 = vand.u32 4294901760, %v2369_v52 }
  0x81   :  { %661 = vmatpush1.msra.mxu0 %v2375_v10  ;;  %807 = vmatprep.subr.mxu1 %v2364_v27 }
  0x82   :  { %662 = vmatprep.subr.mxu0 %v2364_v27  ;;  %809 = vmatpush1.msra.mxu1 %v1600_v17  ;;  %v2380_v17 = vand.u32 4294901760, %v1671_v47  ;;  %v2391_v47 = vand.u32 4294901760, %v1856_v41 }
  0x83   :  { %666 = vmatpush1.msra.mxu0 %v2376_v11  ;;  %810 = vmatprep.subr.mxu1 %v2364_v27 }
  0x84   :  { %667 = vmatprep.subr.mxu0 %v2364_v27  ;;  %812 = vmatpush1.msra.mxu1 %v1619_v25  ;;  %v2384_v25 = vand.u32 4294901760, %v1731_v14  ;;  %v887_v14 = vld [vmem:[%s2325_s3] sm:$0xff] }
  0x85   :  { %671 = vmatpush1.msra.mxu0 %v2377_v12  ;;  %813 = vmatprep.subr.mxu1 %v2364_v27 }
  0x86   :  { %672 = vmatprep.subr.mxu0 %v2364_v27  ;;  %815 = vmatpush1.msra.mxu1 %v1626_v28  ;;  %v2385_v28 = vand.u32 4294901760, %v2368_v3 }
  0x87   :  { %676 = vmatpush1.msra.mxu0 %v2378_v15  ;;  %816 = vmatprep.subr.mxu1 %v2364_v27 }
  0x88   :  { %677 = vmatprep.subr.mxu0 %v2364_v27  ;;  %818 = vmatpush1.msra.mxu1 %v1649_v36  ;;  %v2388_v36 = vand.u32 4294901760, %v2371_v8 }
  0x89   :  { %681 = vmatpush1.msra.mxu0 %v2379_v16  ;;  %819 = vmatprep.subr.mxu1 %v2364_v27 }
  0x8a   :  { %682 = vmatprep.subr.mxu0 %v2364_v27  ;;  %821 = vmatpush1.msra.mxu1 %v1660_v42  ;;  %v2389_v42 = vand.u32 4294901760, %v1824_v29  ;;  %v2392_v29 = vand.u32 4294901760, %v1872_v39 }
  0x8b   :  { %686 = vmatpush1.msra.mxu0 %v2380_v17  ;;  %822 = vmatprep.subr.mxu1 %v2364_v27 }
  0x8c   :  { %687 = vmatprep.subr.mxu0 %v2364_v27  ;;  %824 = vmatpush1.msra.mxu1 %v1675_v48  ;;  %v2210_v48 = vand.u32 4294901760, %v890_v22 }
  0x8d   :  { %691 = vmatpush1.msra.mxu0 %v2381_v18  ;;  %825 = vmatprep.subr.mxu1 %v2364_v27 }
  0x8e   :  { %692 = vmatprep.subr.mxu0 %v2364_v27  ;;  %827 = vmatpush1.msra.mxu1 %v1700_v58  ;;  %v2216_v55 = vsub.f32 %v890_v22, %v2210_v48  ;;  %v2218_v58 = vand.u32 4294901760, %v889_v54 }
  0x8f   :  { %696 = vmatpush1.msra.mxu0 %v2382_v20  ;;  %828 = vmatprep.subr.mxu1 %v2364_v27 }
  0x90   :  { %697 = vmatprep.subr.mxu0 %v2364_v27  ;;  %830 = vmatpush1.msra.mxu1 %v1705_v60  ;;  %v888_v60 = vld [vmem:[%s2325_s3 + $0x8] sm:$0xff]  ;;  %v1003_v0 = vand.u32 4294901760, %v2216_v55  ;;  %v2227_v1 = vsub.f32 %v889_v54, %v2218_v58 }
  0x91   :  { %701 = vmatpush1.msra.mxu0 %v2383_v21  ;;  %831 = vmatprep.subr.mxu1 %v2364_v27 }
  0x92   :  { %702 = vmatprep.subr.mxu0 %v2364_v27  ;;  %833 = vmatpush1.msra.mxu1 %v1728_v13  ;;  %v2229_v13 = vand.u32 4294901760, %v888_v60 }
  0x93   :  { %706 = vmatpush1.msra.mxu0 %v2384_v25  ;;  %834 = vmatprep.subr.mxu1 %v2364_v27 }
  0x94   :  { %707 = vmatprep.subr.mxu0 %v2364_v27  ;;  %836 = vmatpush1.msra.mxu1 %v1745_v33  ;;  %v1010_v33 = vand.u32 4294901760, %v2227_v1 }
  0x95   :  { %711 = vmatpush1.msra.mxu0 %v2385_v28  ;;  %851 = vmatprep.subr.mxu1 %v2364_v27 }
  0x96   :  { %712 = vmatprep.subr.mxu0 %v2364_v27  ;;  %853 = vmatpush2.msra.mxu1 %v1757_v44  ;;  %v2241_v44 = vsub.f32 %v888_v60, %v2229_v13 }
  0x97   :  { %716 = vmatpush1.msra.mxu0 %v2386_v30  ;;  %854 = vmatprep.subr.mxu1 %v2364_v27  ;;  %v892_v30 = vstv %s2326_s4  ;;  %s1503_s4 = scalar_lea.vmem %s1392_s6, 32 }
  0x98   :  { %717 = vmatprep.subr.mxu0 %v2364_v27  ;;  %856 = vmatpush2.msra.mxu1 %v1779_v62  ;;  %v1011_v62 = vsub.f32 %v2227_v1, %v1010_v33  ;;  %p1505_p2 = scmp.lt.s32.totalorder %s1503_s4, %s1499_s7 }
  0x99   :  { %721 = vmatpush1.msra.mxu0 %v2387_v35  ;;  %857 = vmatprep.subr.mxu1 %v2364_v27 }
  0x9a   :  { %736 = vmatprep.subr.mxu0 %v2364_v27  ;;  %859 = vmatpush2.msra.mxu1 %v1789_v31  ;;  %v1017_v31 = vand.u32 4294901760, %v2241_v44  ;;  %p1506_p3 = por %p1505_p2, %p1504_p1 }
  0x9b   :  { %740 = vmatpush2.msra.mxu0 %v2388_v36  ;;  %860 = vmatprep.subr.mxu1 %v2364_v27 }
  0x9c   :  { %741 = vmatprep.subr.mxu0 %v2364_v27  ;;  %862 = vmatpush2.msra.mxu1 %v1816_v45  ;;  %v2243_v45 = vand.u32 4294901760, %v887_v14  ;;  %v1018_v41 = vsub.f32 %v2241_v44, %v1017_v31  ;;  %p1507_p4 = pnand %p1506_p3, %p1500_p0 }
  0x9d   :  { %745 = vmatpush2.msra.mxu0 %v2389_v42  ;;  %863 = vmatprep.subr.mxu1 %v2364_v27 }
  0x9e   :  { %746 = vmatprep.subr.mxu0 %v2364_v27  ;;  %782 = vmatprep.mubr.f32.mxu0 %v1958_v40 }
  0x9f   :  { %750 = vmatpush2.msra.mxu0 %v2390_v43  ;;  %865 = vmatpush2.msra.mxu1 %v1828_v53 }
  0xa0   :  { %751 = vmatprep.subr.mxu0 %v2364_v27  ;;  %866 = vmatprep.subr.mxu1 %v2364_v27 }
  0xa1   :  { %755 = vmatpush2.msra.mxu0 %v2391_v47  ;;  %868 = vmatpush2.msra.mxu1 %v1843_v59  ;;  %v2252_v59 = vsub.f32 %v887_v14, %v2243_v45 }
  0xa2   :  { %756 = vmatprep.subr.mxu0 %v2364_v27  ;;  %869 = vmatprep.subr.mxu1 %v2364_v27 }
  0xa3   :  { %760 = vmatpush2.msra.mxu0 %v2392_v29  ;;  %871 = vmatpush2.msra.mxu1 %v1850_v49  ;;  %v1012_v49 = vand.u32 4294901760, %v1011_v62  ;;  %v1024_v39 = vand.u32 4294901760, %v2252_v59 }
  0xa4   :  { %761 = vmatprep.subr.mxu0 %v2364_v27  ;;  %872 = vmatprep.subr.mxu1 %v2364_v27 }
  0xa5   :  { %765 = vmatpush2.msra.mxu0 %v384_v57  ;;  %874 = vmatpush2.msra.mxu1 %v1876_v23  ;;  %v1019_v23 = vand.u32 4294901760, %v1018_v41  ;;  %v1025_v37 = vsub.f32 %v2252_v59, %v1024_v39 }
  0xa6   :  { %766 = vmatprep.subr.mxu0 %v2364_v27  ;;  %875 = vmatprep.subr.mxu1 %v2364_v27 }
  0xa7   :  { %770 = vmatpush2.msra.mxu0 %v391_v61  ;;  %877 = vmatpush2.msra.mxu1 %v1888_v26  ;;  %v1004_v26 = vsub.f32 %v2216_v55, %v1003_v0  ;;  %v1026_v57 = vand.u32 4294901760, %v1025_v37 }
  0xa8   :  { %771 = vmatprep.subr.mxu0 %v2364_v27  ;;  %879 = vmatprep.mubr.f32.mxu1 %v1958_v40 }
  0xa9   :  { %775 = vmatpush2.msra.mxu0 %v398_v19  ;;  %881 = vmatmul.mubr.f32.vlgmr.msra.gmra.mxu1 %v1955_v34  ;;  %v1005_v53 = vand.u32 4294901760, %v1004_v26 }
  0xaa   :  { %776 = vmatprep.subr.mxu0 %v2364_v27  ;;  %1440 = vmatprep.subr.mxu1 %v2364_v27 }
  0xab   :  { %780 = vmatpush2.msra.mxu0 %v405_v51  ;;  %1441 = vmatpush3.msra.mxu1 %v1005_v53 }
  0xac   :  { %784 = vmatmul.mubr.f32.vlgmr.msra.gmra.mxu0 %v1955_v34  ;;  %1429 = vmatprep.subr.mxu0 %v2364_v27 }
  0xad   :  { %1430 = vmatpush3.msra.mxu0 %v2210_v48  ;;  %1442 = vmatprep.subr.mxu1 %v2364_v27 }
  0xae   :  { %1431 = vmatprep.subr.mxu0 %v2364_v27  ;;  %1443 = vmatpush3.msra.mxu1 %v1012_v49 }
  0xaf   :  { %1432 = vmatpush3.msra.mxu0 %v2218_v58  ;;  %1444 = vmatprep.subr.mxu1 %v2364_v27 }
  0xb0   :  { %1433 = vmatprep.subr.mxu0 %v2364_v27  ;;  %1448 = vmatprep.mubr.msk.f32.mxu1 %vm1523_vm2, %v2364_v27 }
  0xb1   :  { %1434 = vmatpush3.msra.mxu0 %v2229_v13  ;;  %1445 = vmatpush3.msra.mxu1 %v1019_v23 }
  0xb2   :  { %1435 = vmatprep.subr.mxu0 %v2364_v27  ;;  %1437 = vmatprep.mubr.msk.f32.mxu0 %vm1523_vm2, %v2364_v27 }
  0xb3   :  { %1436 = vmatpush3.msra.mxu0 %v2243_v45  ;;  %1446 = vmatprep.subr.mxu1 %v2364_v27 }
  0xb4   :  { %1451 = vmatprep.subr.mxu0 %v2364_v27  ;;  %1447 = vmatpush3.msra.mxu1 %v1026_v57 }
  0xb5   :  { %1462 = vmatprep.subr.mxu1 %v2364_v27 }
 0x100   :  { %v413_v9 = vpop.f32.mrf.mxu1 }
 0x102   :  { %v415_v61 = vpop.f32.mrf.mxu1 }
 0x108   :  { %v216_v19 = vpop.f32.mrf.mxu0 }
 0x109   :  { %v217_v51 = vadd.f32 %v216_v19, %v102_v50 }
 0x10a   :  { %v218_v34 = vpop.f32.mrf.mxu0 }
 0x10b   :  { %v414_v40 = vadd.f32 %v413_v9, %v217_v51 }
 0x133   :  { %v638_v24 = vpop.f32.mrf.mxu1 }
 0x135   :  { %v640_v32 = vpop.f32.mrf.mxu1 }
 0x13a   :  { %v537_v63 = vpop.f32.mrf.mxu0 }
 0x13b   :  { %v538_v46 = vadd.f32 %v537_v63, %v414_v40 }
 0x13c   :  { %v539_v2 = vpop.f32.mrf.mxu0 }
 0x13d   :  { %v639_v38 = vadd.f32 %v638_v24, %v538_v46 }
 0x169   :  { %v882_v56 = vpop.f32.mrf.mxu1 }
 0x16b   :  { %v884_v3 = vpop.f32.mrf.mxu1 }
 0x16c   :  { %v785_v52 = vpop.f32.mrf.mxu0 }
 0x16d   :  { %v786_v7 = vadd.f32 %v785_v52, %v639_v38 }
 0x16e   :  { %v787_v8 = vpop.f32.mrf.mxu0 }
 0x16f   :  { %v883_v4 = vadd.f32 %v882_v56, %v786_v7 }
 0x171   :  { %v886_v5 = vmax.f32 %v883_v4, 0.0 }
 0x173   :  { %v895_v6 = vsel %vm893_vm3, %v886_v5, 0 }
 0x174   :  { %v966_v10 = vand.u32 4294901760, %v895_v6 }
 0x176   :  { %v967_v11 = vsub.f32 %v895_v6, %v966_v10  ;;  %1449 = vmatmul.mubr.f32.vlgmr.msra.gmra.mxu1 %v966_v10 }
 0x177   :  { %1463 = vmatpush3.msra.mxu1 %v2210_v48  ;;  %1470 = vmatprep.mubr.msk.f32.mxu1 %vm1523_vm2, %v2364_v27 }
 0x178   :  { %1464 = vmatprep.subr.mxu1 %v2364_v27  ;;  %v968_v12 = vand.u32 4294901760, %v967_v11 }
 0x179   :  { %1465 = vmatpush3.msra.mxu1 %v2218_v58 }
 0x17a   :  { %1466 = vmatprep.subr.mxu1 %v2364_v27  ;;  %v969_v15 = vsub.f32 %v967_v11, %v968_v12 }
 0x17b   :  { %1467 = vmatpush3.msra.mxu1 %v2229_v13 }
 0x17c   :  { %1468 = vmatprep.subr.mxu1 %v2364_v27  ;;  %v970_v16 = vand.u32 4294901760, %v969_v15 }
 0x17d   :  { %1469 = vmatpush3.msra.mxu1 %v2243_v45 }
 0x17e   :  { %1471 = vmatmul.mubr.f32.vlgmr.msra.gmra.mxu1 %v968_v12  ;;  %1484 = vmatprep.subr.mxu1 %v2364_v27 }
 0x17f   :  { %1438 = vmatmul.mubr.f32.vlgmr.msra.gmra.mxu0 %v970_v16  ;;  %1485 = vmatpush3.msra.mxu1 %v2210_v48 }
 0x180   :  { %1452 = vmatpush3.msra.mxu0 %v2216_v55  ;;  %1486 = vmatprep.subr.mxu1 %v2364_v27 }
 0x181   :  { %1453 = vmatprep.subr.mxu0 %v2364_v27  ;;  %1487 = vmatpush3.msra.mxu1 %v2218_v58 }
 0x182   :  { %1454 = vmatpush3.msra.mxu0 %v2227_v1  ;;  %1488 = vmatprep.subr.mxu1 %v2364_v27 }
 0x183   :  { %1455 = vmatprep.subr.mxu0 %v2364_v27  ;;  %1489 = vmatpush3.msra.mxu1 %v2229_v13 }
 0x184   :  { %1456 = vmatpush3.msra.mxu0 %v2241_v44  ;;  %1490 = vmatprep.subr.mxu1 %v2364_v27 }
 0x185   :  { %1457 = vmatprep.subr.mxu0 %v2364_v27  ;;  %1459 = vmatprep.mubr.msk.f32.mxu0 %vm1523_vm2, %v2364_v27 }
 0x186   :  { %1458 = vmatpush3.msra.mxu0 %v2252_v59  ;;  %1491 = vmatpush3.msra.mxu1 %v2243_v45 }
 0x187   :  { %1492 = vmatprep.mubr.msk.f32.mxu1 %vm1523_vm2, %v2364_v27  ;;  %1460 = vmatmul.mubr.f32.vlgmr.msra.gmra.mxu0 %v967_v11 }
 0x188   :  { %1473 = vmatprep.subr.mxu0 %v2364_v27  ;;  %1493 = vmatmul.mubr.f32.vlgmr.msra.gmra.mxu1 %v966_v10 }
 0x189   :  { %1474 = vmatpush3.msra.mxu0 %v1003_v0  ;;  %1481 = vmatprep.mubr.msk.f32.mxu0 %vm1523_vm2, %v2364_v27 }
 0x18a   :  { %1475 = vmatprep.subr.mxu0 %v2364_v27 }
 0x18b   :  { %1476 = vmatpush3.msra.mxu0 %v1010_v33 }
 0x18c   :  { %1477 = vmatprep.subr.mxu0 %v2364_v27 }
 0x18d   :  { %1478 = vmatpush3.msra.mxu0 %v1017_v31 }
 0x18e   :  { %1479 = vmatprep.subr.mxu0 %v2364_v27 }
 0x18f   :  { %1480 = vmatpush3.msra.mxu0 %v1024_v39 }
 0x190   :  { %1482 = vmatmul.mubr.f32.vlgmr.msra.gmra.mxu0 %v966_v10 }
 0x236   :  { %v1063_v17 = vpop.f32.mrf.mxu1 }
 0x238   :  { %v1450_v18 = vpop.f32.mrf.mxu1 }
 0x23e   :  { %v1220_v20 = vpop.f32.mrf.mxu1 }
 0x23f   :  { %v972_v21 = vpop.f32.mrf.mxu0 }
 0x240   :  { %v1472_v25 = vpop.f32.mrf.mxu1  ;;  %v973_v35 = vadd.f32 %v972_v21, %v892_v30 }
 0x241   :  { %v1439_v28 = vpop.f32.mrf.mxu0 }
 0x242   :  { %v1064_v43 = vadd.f32 %v1063_v17, %v973_v35 }
 0x247   :  { %v1143_v36 = vpop.f32.mrf.mxu0 }
 0x248   :  { %v1378_v42 = vpop.f32.mrf.mxu1  ;;  %v1144_v29 = vadd.f32 %v1143_v36, %v1064_v43 }
 0x249   :  { %v1461_v47 = vpop.f32.mrf.mxu0 }
 0x24a   :  { %v1494_v27 = vpop.f32.mrf.mxu1  ;;  %v1221_v22 = vadd.f32 %v1220_v20, %v1144_v29 }
 0x250   :  { %v1303_v48 = vpop.f32.mrf.mxu0 }
 0x251   :  { %v1304_v54 = vadd.f32 %v1303_v48, %v1221_v22 }
 0x252   :  { %v1483_v55 = vpop.f32.mrf.mxu0 }
 0x253   :  { %v1379_v58 = vadd.f32 %v1378_v42, %v1304_v54 }
 0x255   :  { %v1382_v60 = vmax.f32 %v1379_v58, 0.0 }
 0x257   :  { %1384 = vst.msk [vmem:[#allocation4] sm:$0x1] %vm1383_vm4, %v1382_v60 }
 0x258   :  { %1510 = shalt.err (!%p1507_p4)
}
 0x259   :  { %1394 = dma.vmem_to_hbm [thread:$0]  %s1392_s6, 16, %s2327_s5, [#allocation5]  }
 0x25a   :  { %1519 = dma.done.wait [#allocation5], 16  }
 0x25b   :  { %1520 = vsyncadd [#allocation5], 4294967280 }
 0x25c   :  { %1398 = vsyncpa [#allocation5], 1 }

</bundles_post_ra>
